<compile_context>
chip_gen: v6e
topology: v6e:2x2x1
jax: 0.10.0
libtpu: 0.0.40
codegen_flags: <defaults>
</compile_context>

<pallas_src>
import jax
import jax.numpy as jnp
from jax.experimental import pallas as pl
from jax.experimental.pallas import tpu as pltpu


def _outconv_kernel(x_ref, w_ref, b_ref, o_ref):
    # x_ref: (1, C_in, TS)   w_ref: (C_out, C_in)   b_ref: (C_out, 1)
    # o_ref: (1, C_out, TS)  -- spatial (TS) on the lane axis, lane-dense I/O.
    x = x_ref[0]                                                      # (C_in, TS)
    acc = jnp.dot(w_ref[...], x, preferred_element_type=jnp.float32)  # (C_out, TS)
    o_ref[0] = (acc + b_ref[...].astype(jnp.float32)).astype(o_ref.dtype)


def _choose_tile(s, tile_s):
    """Pick a lane-dense spatial tile: full extent if small, else a multiple of
    128 (preferring one that divides S so no block is ragged/masked)."""
    if s <= tile_s:
        return s                       # full-extent block (always legal)
    ts = max((tile_s // 128) * 128, 128)
    # Cheap search for an exact divisor (keeps every store unmasked).
    cand = ts
    for _ in range(16):
        if cand >= 128 and s % cand == 0:
            return cand
        cand -= 128
    return ts


def outconv_pallas(x, weight, bias, *, tile_s=2048):
    """1x1x1 Conv3d (pointwise channel mixing).

    x:      (N, C_in, D, H, W)
    weight: (C_out, C_in, 1, 1, 1)
    bias:   (C_out,)
    returns (N, C_out, D, H, W)
    """
    n, c_in, d, h, w = x.shape
    c_out = weight.shape[0]
    s = d * h * w

    # Free reshapes only -- channels stay on sublanes, spatial goes to lanes.
    x3 = x.reshape(n, c_in, s)                          # (N, C_in, S)
    w2d = weight.reshape(c_out, c_in).astype(x.dtype)   # (C_out, C_in)
    b2d = bias.reshape(c_out, 1).astype(x.dtype)        # (C_out, 1)

    ts = _choose_tile(s, tile_s)
    grid = (n, pl.cdiv(s, ts))

    itemsize = jnp.dtype(x.dtype).itemsize
    cost = pl.CostEstimate(
        flops=2 * n * s * c_in * c_out,
        transcendentals=0,
        bytes_accessed=(n * s * (c_in + c_out) + c_out * c_in + c_out) * itemsize,
    )

    out3 = pl.pallas_call(
        _outconv_kernel,
        out_shape=jax.ShapeDtypeStruct((n, c_out, s), x.dtype),
        grid_spec=pltpu.PrefetchScalarGridSpec(
            num_scalar_prefetch=0,
            grid=grid,
            in_specs=[
                pl.BlockSpec((1, c_in, ts), lambda b, si: (b, 0, si)),
                pl.BlockSpec((c_out, c_in), lambda b, si: (0, 0)),
                pl.BlockSpec((c_out, 1), lambda b, si: (0, 0)),
            ],
            out_specs=pl.BlockSpec((1, c_out, ts), lambda b, si: (b, 0, si)),
        ),
        compiler_params=pltpu.CompilerParams(
            dimension_semantics=("parallel", "parallel"),
        ),
        cost_estimate=cost,
    )(x3, w2d, b2d)

    return out3.reshape(n, c_out, d, h, w)   # free reshape back to NCDHW


if __name__ == "__main__":
    key = jax.random.PRNGKey(0)
    k_x, k_w, k_b = jax.random.split(key, 3)

    # Small shapes consistent with Conv3d(in_ch, out_ch, kernel_size=1).
    # S = D*H*W = 4096 -> two spatial tiles of 2048, grid = (2, 2).
    N, C_in, C_out, D, H, W = 2, 4, 3, 8, 16, 32

    x = jax.random.normal(k_x, (N, C_in, D, H, W), dtype=jnp.float32)
    weight = jax.random.normal(k_w, (C_out, C_in, 1, 1, 1), dtype=jnp.float32) * 0.1
    bias = jax.random.normal(k_b, (C_out,), dtype=jnp.float32) * 0.1

    out = jax.block_until_ready(outconv_pallas(x, weight, bias))

    # Reference: pointwise conv == channel einsum + bias.
    ref = jnp.einsum("ncdhw,oc->nodhw", x, weight.reshape(C_out, C_in)) + bias[
        None, :, None, None, None
    ]
    assert out.shape == (N, C_out, D, H, W)
    assert jnp.allclose(out, ref, atol=1e-5, rtol=1e-5), float(
        jnp.max(jnp.abs(out - ref))
    )

    print("KERNEL_OK")
</pallas_src>

<mosaic_0001>
module attributes {stable_mosaic.version = 11 : i64} {
  func.func @_outconv_kernel(%arg0: i32, %arg1: i32, %arg2: memref<1x4x2048xf32, #tpu.memory_space<vmem>>, %arg3: memref<3x4xf32, #tpu.memory_space<vmem>>, %arg4: memref<3x1xf32, #tpu.memory_space<vmem>>, %arg5: memref<1x3x2048xf32, #tpu.memory_space<vmem>>) attributes {dimension_semantics = [#tpu.dimension_semantics<parallel>, #tpu.dimension_semantics<parallel>], iteration_bounds = array<i64: 2, 2>, scalar_prefetch = 0 : i64, scratch_operands = 0 : i64, tpu.core_type = #tpu.core_type<tc>, window_params = [{transform_indices = @transform_0, window_bounds = array<i64: 1, 4, 2048>}, {pipeline_mode = #tpu.pipeline_mode<synchronous>, transform_indices = @transform_1, window_bounds = array<i64: 3, 4>}, {pipeline_mode = #tpu.pipeline_mode<synchronous>, transform_indices = @transform_2, window_bounds = array<i64: 3, 1>}, {transform_indices = @transform_3, window_bounds = array<i64: 1, 3, 2048>}]} {
    %c0 = arith.constant 0 : index
    %c0_0 = arith.constant 0 : index
    %c0_1 = arith.constant 0 : index
    %0 = vector.load %arg2[%c0, %c0_0, %c0_1] : memref<1x4x2048xf32, #tpu.memory_space<vmem>>, vector<1x4x2048xf32>
    %1 = vector.shape_cast %0 : vector<1x4x2048xf32> to vector<4x2048xf32>
    %c0_2 = arith.constant 0 : index
    %c0_3 = arith.constant 0 : index
    %2 = vector.load %arg3[%c0_2, %c0_3] : memref<3x4xf32, #tpu.memory_space<vmem>>, vector<3x4xf32>
    %cst = arith.constant dense<0.000000e+00> : vector<3x2048xf32>
    %3 = tpu.matmul %2, %1, %cst {dimension_numbers = #tpu.dot_dimension_numbers<[1], [0], [0], [1], [0, 0, 1, 1], [], []>} : vector<3x4xf32>, vector<4x2048xf32>, vector<3x2048xf32> -> vector<3x2048xf32>
    %c0_4 = arith.constant 0 : index
    %c0_5 = arith.constant 0 : index
    %4 = vector.load %arg4[%c0_4, %c0_5] : memref<3x1xf32, #tpu.memory_space<vmem>>, vector<3x1xf32>
    %5 = vector.broadcast %4 : vector<3x1xf32> to vector<3x2048xf32>
    %6 = arith.addf %3, %5 : vector<3x2048xf32>
    %c0_6 = arith.constant 0 : index
    %c0_7 = arith.constant 0 : index
    %c0_8 = arith.constant 0 : index
    %7 = vector.load %arg5[%c0_6, %c0_7, %c0_8] : memref<1x3x2048xf32, #tpu.memory_space<vmem>>, vector<1x3x2048xf32>
    %8 = vector.shape_cast %7 : vector<1x3x2048xf32> to vector<3x2048xf32>
    %9 = vector.shape_cast %6 : vector<3x2048xf32> to vector<1x3x2048xf32>
    tpu.vector_store %arg5[%c0_6, %c0_7, %c0_8], %9 {strides = array<i32>} : memref<1x3x2048xf32, #tpu.memory_space<vmem>>, vector<1x3x2048xf32>,
    return
  }
  func.func @transform_0(%arg0: i32, %arg1: i32) -> (i32, i32, i32) {
    %c0_i32 = arith.constant 0 : i32
    %c0_i32_0 = arith.constant 0 : i32
    return %arg0, %c0_i32, %arg1 : i32, i32, i32
  }
  func.func @transform_1(%arg0: i32, %arg1: i32) -> (i32, i32) {
    %c0_i32 = arith.constant 0 : i32
    %c0_i32_0 = arith.constant 0 : i32
    %c0_i32_1 = arith.constant 0 : i32
    return %c0_i32, %c0_i32_0 : i32, i32
  }
  func.func @transform_2(%arg0: i32, %arg1: i32) -> (i32, i32) {
    %c0_i32 = arith.constant 0 : i32
    %c0_i32_0 = arith.constant 0 : i32
    %c0_i32_1 = arith.constant 0 : i32
    return %c0_i32, %c0_i32_0 : i32, i32
  }
  func.func @transform_3(%arg0: i32, %arg1: i32) -> (i32, i32, i32) {
    %c0_i32 = arith.constant 0 : i32
    %c0_i32_0 = arith.constant 0 : i32
    return %arg0, %c0_i32, %arg1 : i32, i32, i32
  }
}

</mosaic_0001>

<bundles_post_ra>
// kernel: tpu_custom_call.1
= control target key start
LH: loop header
LB: loop body
LE: loop exit
PB: predicated region body
PF: predicated region fallthrough
CT: control target
= control target key end

     0   :  { %8 = vsyncpa [#allocation3], 0  ;;  %s1407_s0 = inlined_call_operand.hbm [shape: f32[2,4,4096], index: 0, kind: input, shape index: {}]   ;;  %s1408_s1 = inlined_call_operand.vmem [shape: f32[3,4], index: 1, kind: input, shape index: {}]   ;;  %s1409_s2 = inlined_call_operand.vmem [shape: f32[3,1], index: 2, kind: input, shape index: {}]   ;;  %s1410_s3 = inlined_call_operand.vmem [shape: f32[2,3,4096], index: 3, kind: output, shape index: {}]  }
   0x1   :  { %10 = vsyncpa [#allocation3 + $0x1], 0  ;;  %s1231_s12 = smov 0   ;;  %s1233_s13 = smov 0  }
   0x2   :  { %s1235_s14 = smov 0   ;;  %s1237_s15 = smov 0  }
   0x3   :  { %s1239_s16 = smov 0   ;;  %s1241_s17 = smov 0  }
   0x4   :  { %s1243_s18 = smov 0   ;;  %s1245_s19 = smov 0  }
   0x5 LB: > { %s991_s20 = sadd.s32 4294967295, %s1206_s19   ;;  %s25_s21 = sadd.s32 1, %s1198_s17  ;;  %s1206_s19 = sphi %s1245_s19, %s16_s19   ;;  %s1202_s18 = sphi %s1243_s18, %s1420_s18   ;;  %s1198_s17 = sphi %s1241_s17, %s1419_s17   ;;  %s1194_s16 = sphi %s1239_s16, %s1418_s16   ;;  %s1190_s15 = sphi %s1237_s15, %s1417_s15   ;;  %s1186_s14 = sphi %s1235_s14, %s1416_s14   ;;  %s1182_s13 = sphi %s1233_s13, %s1415_s13   ;;  %s1178_s12 = sphi %s1231_s12, %s1414_s12  }
   0x6   : > { %p26_p0 = scmp.ge.s32.totalorder %s25_s21, 2  ;;  %s28_s22 = sadd.s32 1, %s1202_s18 }
   0x7   : > { %s37_s23 = sadd.s32 1, %s1186_s14  ;;  %p44_p1 = scmp.ne.s32.totalorder %s1186_s14, %s1182_s13 }
   0x8   : > { %s1422_s21 = smov (%p26_p0, %s25_s21), 0  ;;  %s1424_s22 = smov (!%p26_p0, %s28_s22), %s1202_s18 }
   0x9   : > { %s33_s24 = ssub.s32 %s1198_s17, %s1422_s21  ;;  %p45_p2 = scmp.eq.s32.totalorder %s1206_s19, 0 }
   0xa   : > { %p30_p3 = scmp.ge.s32.totalorder %s1424_s22, 2  ;;  %p50_p4 = scmp.ne.s32.totalorder %s1182_s13, %s1178_s12 }
   0xb   : > { %p1282_p5 = por %p45_p2, %p44_p1  ;;  %p51_p6 = scmp.eq.s32.totalorder %s991_s20, 0 }
   0xc   : > { %s1426_s22 = smov (%p30_p3, %s1424_s22), 0  ;;  %p1036_p8 = scmp.lt.s32.totalorder %s1206_s19, 4 }
   0xd   : > { %p1288_p7 = por %p51_p6, %p50_p4  ;;  %s32_s27 = ssub.s32 %s1202_s18, %s1426_s22 }
   0xe   : > { %s34_s28 = sor.u32 %s33_s24, %s32_s27  ;;  %s150_s29 = sand.u32 1, %s1186_s14  }
   0xf   : > { %p35_p9 = scmp.eq.s32.totalorder %s34_s28, 0  ;;  %s995_s30 = sshll.u32 %s150_s29, 6 }
  0x10   : > { %s996_s4 = sshll.u32 %s1198_s17, 4  ;;  %s997_s6 = sshll.u32 %s1202_s18, 5 }
  0x11   : > { %s1298_s5 = scalar_select %p35_p9, %s1186_s14, %s37_s23  }
  0x12   : > { %s160_s7 = sadd.s32 %s997_s6, %s996_s4  ;;  %s154_s8 = scalar_lea.vmem [#allocation2], %s995_s30 }
  0x13   : > { %s164_s9 = sshll.u32 %s154_s8, 4  ;;  %s998_s10 = sshll.u32 %s160_s7, 6  ;;  %s165_s9 = int_to_ptr.vmem [resolvable:$true] %s164_s9 }
  0x14   : > { %s162_s20 = scalar_lea.hbm %s1407_s0, %s998_s10  ;;  %p1308_p10 = pnand %p1036_p8, %p1282_p5 }
  0x15   : > { %p999_p11 = scmp.ge.s32.totalorder %s1206_s19, 1  ;;  %p169_p12 = scmp.lt.s32.totalorder %s1206_s19, 5 }
  0x16   : > { %s151_s23 = scalar_lea.sflag [#allocation3], %s150_s29  ;;  %p1114_p13 = pneg %p1308_p10 }
  0x17   : > { %s1125_s27 = scalar_lea.vmem %s165_s9, 1024  ;;  %s1208_s28 = smov [#allocation2]  }
  0x18   : > { %p1126_p0 = scmp.ne.s32.totalorder %s165_s9, %s1125_s27  ;;  %s1130_s30 = sshll.u32 %s1208_s28, 4  ;;  %s1131_s30 = int_to_ptr.vmem [resolvable:$false] %s1130_s30 }
  0x19   : > { %s1132_s4 = scalar_lea.vmem %s1131_s30, 2048  ;;  %p1133_p3 = scmp.lt.s32.totalorder %s165_s9, %s1131_s30 }
  0x1a   : > { %p1128_p1 = pnand %p1126_p0, %p1114_p13  ;;  %p1134_p4 = scmp.lt.s32.totalorder %s1132_s4, %s1125_s27 }
  0x1c   : > { %p1129_p2 = pneg %p1128_p1  ;;  %p1135_p5 = por %p1134_p4, %p1133_p3 }
  0x1e   : > { %p1136_p6 = pnand %p1135_p5, %p1129_p2 }
  0x20   : > { %1139 = shalt.err (!%p1136_p6)
}
  0x21   : > { %1035 = dma.hbm_to_vmem [thread:$0]  (!%p1308_p10), %s162_s20, 1024, %s165_s9, %s151_s23  }
  0x22   : > { %p170_p8 = pnand %p999_p11, %p169_p12 }
  0x23   : > { %s175_s25 = sand.u32 (!%p170_p8), 1, %s1182_s13  }
  0x24   : > { %173 = sbr.rel (%p170_p8) target bundleno = 259 (0x103), region = 32  ;;  %s1000_s29 = sshll.u32 (!%p170_p8), %s175_s25, 6 }
  0x25   : > { %s176_s6 = scalar_lea.sflag (!%p170_p8), [#allocation3], %s175_s25  ;;  %s1323_s7 = scalar_lea.vmem (!%p170_p8), [#allocation2], %s1000_s29 }
  0x29   : > { %1173 = dma.done.wait (%p1288_p7), %s176_s6, 1024  }
  0x2a   : > { %1175 = vsyncadd (%p1288_p7), %s176_s6, 4294966272  ;;  %v1209_v0 = vmov 0.0   ;;  %v1210_v1 = vmov 0   ;;  %v217_v2 = vld [vmem:[%s1323_s7] sm:$0xff]  ;;  %vm252_vm0 = vcmask 1043456   ;;  %v218_v3 = vld [vmem:[%s1323_s7 + $0x8] sm:$0xff] }
  0x2b   : > { %349 = vmatprep.mubr.f32.mxu0 %v1209_v0  ;;  %420 = vmatprep.mubr.f32.mxu1 %v1209_v0  ;;  %v240_v4 = vcombine.high %v217_v2, %v217_v2  ;;  %v241_v5 = vcombine.high %v218_v3, %v218_v3  ;;  %v219_v6 = vld [vmem:[%s1323_s7 + $0x10] sm:$0xff]  ;;  %v220_v7 = vld [vmem:[%s1323_s7 + $0x18] sm:$0xff]  ;;  %v225_v8 = vld [vmem:[%s1408_s1] sm:$0x7]  ;;  %vm248_vm1 = vcmask 31744   ;;  %s1001_s11 = sshll.u32 %s1190_s15, 4 }
  0x2c   : > { %1103 = vset.pattern.permute.xlu0 %v1210_v1  ;;  %v242_v9 = vcombine.high %v219_v6, %v219_v6  ;;  %v243_v10 = vcombine.high %v220_v7, %v220_v7  ;;  %v221_v11 = vld [vmem:[%s1323_s7 + $0x20] sm:$0xff]  ;;  %v222_v12 = vld [vmem:[%s1323_s7 + $0x28] sm:$0xff]  ;;  %v223_v15 = vld [vmem:[%s1323_s7 + $0x30] sm:$0xff]  ;;  %p208_p7 = scmp.lt.s32.totalorder %s1194_s16, 1  ;;  %p210_p9 = scmp.lt.s32.totalorder %s1001_s11, 31 }
  0x2d   : > { %1004 = vmatprep.subr.msk.mxu0 %vm252_vm0, %v240_v4  ;;  %1007 = vmatprep.subr.msk.mxu1 %vm252_vm0, %v241_v5  ;;  %v244_v13 = vcombine.high %v221_v11, %v221_v11  ;;  %v245_v14 = vcombine.high %v222_v12, %v222_v12  ;;  %v224_v16 = vld [vmem:[%s1323_s7 + $0x38] sm:$0xff]  ;;  %v246_v17 = vcombine.high %v223_v15, %v223_v15  ;;  %v226_v19 = vld [vmem:[%s1409_s2] sm:$0x7] }
  0x2e   : > { %1005 = vmatpush1.msk.msra.mxu0 %vm252_vm0, %v217_v2  ;;  %1008 = vmatpush1.msk.msra.mxu1 %vm252_vm0, %v218_v3  ;;  %v247_v18 = vcombine.high %v224_v16, %v224_v16  ;;  %s1428_s16 = smov (!%p208_p7, %s1194_s16), 1  ;;  %s1430_s11 = smov (!%p210_p9, %s1001_s11), 31 }
  0x2f   : > { %1006 = vmatmul.mubr.msk.f32.vlgmr.msra.gmra.mxu0 %vm248_vm1, %v225_v8  ;;  %1009 = vmatmul.mubr.msk.f32.vlgmr.msra.gmra.mxu1 %vm248_vm1, %v225_v8  ;;  %s1002_s12 = sshll.u32 %s1428_s16, 5 }
  0x30   : > { %1010 = vmatprep.subr.msk.mxu0 %vm252_vm0, %v242_v9  ;;  %1013 = vmatprep.subr.msk.mxu1 %vm252_vm0, %v243_v10  ;;  %s213_s20 = sadd.s32 %s1002_s12, %s1430_s11 }
  0x31   : > { %1011 = vmatpush1.msk.msra.mxu0 %vm252_vm0, %v219_v6  ;;  %1014 = vmatpush1.msk.msra.mxu1 %vm252_vm0, %v220_v7  ;;  %s1003_s24 = sshll.u32 %s213_s20, 2 }
  0x32   : > { %491 = vmatprep.mubr.f32.mxu0 %v1209_v0  ;;  %562 = vmatprep.mubr.f32.mxu1 %v1209_v0  ;;  %s1373_s15 = scalar_lea.vmem %s1410_s3, %s1003_s24 }
  0x33   : > { %1012 = vmatmul.mubr.msk.f32.vlgmr.msra.gmra.mxu0 %vm248_vm1, %v225_v8  ;;  %1015 = vmatmul.mubr.msk.f32.vlgmr.msra.gmra.mxu1 %vm248_vm1, %v225_v8 }
  0x34   : > { %1016 = vmatprep.subr.msk.mxu0 %vm252_vm0, %v244_v13  ;;  %1019 = vmatprep.subr.msk.mxu1 %vm252_vm0, %v245_v14 }
  0x35   : > { %1017 = vmatpush1.msk.msra.mxu0 %vm252_vm0, %v221_v11  ;;  %1020 = vmatpush1.msk.msra.mxu1 %vm252_vm0, %v222_v12 }
  0x36   : > { %633 = vmatprep.mubr.f32.mxu0 %v1209_v0  ;;  %704 = vmatprep.mubr.f32.mxu1 %v1209_v0 }
  0x37   : > { %1018 = vmatmul.mubr.msk.f32.vlgmr.msra.gmra.mxu0 %vm248_vm1, %v225_v8  ;;  %1021 = vmatmul.mubr.msk.f32.vlgmr.msra.gmra.mxu1 %vm248_vm1, %v225_v8 }
  0x38   : > { %1022 = vmatprep.subr.msk.mxu0 %vm252_vm0, %v246_v17  ;;  %1025 = vmatprep.subr.msk.mxu1 %vm252_vm0, %v247_v18 }
  0x39   : > { %1023 = vmatpush1.msk.msra.mxu0 %vm252_vm0, %v223_v15  ;;  %1026 = vmatpush1.msk.msra.mxu1 %vm252_vm0, %v224_v16 }
  0x3a   : > { %775 = vmatprep.mubr.f32.mxu0 %v1209_v0  ;;  %846 = vmatprep.mubr.f32.mxu1 %v1209_v0 }
  0x3b   : > { %1024 = vmatmul.mubr.msk.f32.vlgmr.msra.gmra.mxu0 %vm248_vm1, %v225_v8  ;;  %1027 = vmatmul.mubr.msk.f32.vlgmr.msra.gmra.mxu1 %vm248_vm1, %v225_v8 }
  0x3c   : > { %229 = vperm.xlu0 %1103, %v226_v19  }
  0xb7   : > { %v230_v20 = vpop.permute.xlu0 %229 }
  0xef   : > { %v351_v21 = vpop.f32.mrf.mxu0  ;;  %v422_v22 = vpop.f32.mrf.mxu1 }
  0xf0   : > { %v352_v25 = vadd.f32 %v351_v21, %v230_v20  ;;  %v423_v27 = vadd.f32 %v422_v22, %v230_v20 }
  0xf1   : > { %v353_v23 = vpop.f32.mrf.mxu0  ;;  %v424_v24 = vpop.f32.mrf.mxu1 }
  0xf2   : > { %v354_v26 = vadd.f32 %v353_v23, %v230_v20  ;;  %v425_v28 = vadd.f32 %v424_v24, %v230_v20 }
  0xf3   : > { %v493_v29 = vpop.f32.mrf.mxu0  ;;  %v564_v30 = vpop.f32.mrf.mxu1 }
  0xf4   : > { %v869_v31 = vcombine.low %v352_v25, %v354_v26  ;;  %v870_v32 = vcombine.low %v423_v27, %v425_v28  ;;  %v494_v35 = vadd.f32 %v493_v29, %v230_v20  ;;  %v565_v36 = vadd.f32 %v564_v30, %v230_v20 }
  0xf5   : > { %v495_v33 = vpop.f32.mrf.mxu0  ;;  %v566_v34 = vpop.f32.mrf.mxu1 }
  0xf6   : > { %885 = vst [vmem:[%s1373_s15] sm:$0x77] %v869_v31  ;;  %886 = vst [vmem:[%s1373_s15 + $0x8] sm:$0x77] %v870_v32  ;;  %v496_v37 = vadd.f32 %v495_v33, %v230_v20  ;;  %v567_v38 = vadd.f32 %v566_v34, %v230_v20 }
  0xf7   : > { %v635_v39 = vpop.f32.mrf.mxu0  ;;  %v706_v40 = vpop.f32.mrf.mxu1 }
  0xf8   : > { %v871_v41 = vcombine.low %v494_v35, %v496_v37  ;;  %v872_v42 = vcombine.low %v565_v36, %v567_v38  ;;  %v636_v45 = vadd.f32 %v635_v39, %v230_v20  ;;  %v707_v46 = vadd.f32 %v706_v40, %v230_v20 }
  0xf9   : > { %v637_v43 = vpop.f32.mrf.mxu0  ;;  %v708_v44 = vpop.f32.mrf.mxu1 }
  0xfa   : > { %887 = vst [vmem:[%s1373_s15 + $0x10] sm:$0x77] %v871_v41  ;;  %888 = vst [vmem:[%s1373_s15 + $0x18] sm:$0x77] %v872_v42  ;;  %v638_v47 = vadd.f32 %v637_v43, %v230_v20  ;;  %v709_v48 = vadd.f32 %v708_v44, %v230_v20 }
  0xfb   : > { %v777_v49 = vpop.f32.mrf.mxu0  ;;  %v848_v50 = vpop.f32.mrf.mxu1 }
  0xfc   : > { %v873_v51 = vcombine.low %v636_v45, %v638_v47  ;;  %v874_v52 = vcombine.low %v707_v46, %v709_v48  ;;  %v778_v55 = vadd.f32 %v777_v49, %v230_v20  ;;  %v849_v56 = vadd.f32 %v848_v50, %v230_v20 }
  0xfd   : > { %v779_v53 = vpop.f32.mrf.mxu0  ;;  %v850_v54 = vpop.f32.mrf.mxu1 }
  0xfe   : > { %889 = vst [vmem:[%s1373_s15 + $0x20] sm:$0x77] %v873_v51  ;;  %890 = vst [vmem:[%s1373_s15 + $0x28] sm:$0x77] %v874_v52  ;;  %v780_v57 = vadd.f32 %v779_v53, %v230_v20  ;;  %v851_v58 = vadd.f32 %v850_v54, %v230_v20 }
 0x100   : > { %v875_v59 = vcombine.low %v778_v55, %v780_v57  ;;  %v876_v60 = vcombine.low %v849_v56, %v851_v58 }
 0x102   : > { %891 = vst [vmem:[%s1373_s15 + $0x30] sm:$0x77] %v875_v59  ;;  %892 = vst [vmem:[%s1373_s15 + $0x38] sm:$0x77] %v876_v60 }
 0x103 PF: > { %s16_s19 = sadd.s32 1, %s1206_s19   ;;  %s1414_s12 = smov %s1182_s13 }
 0x104   : > { %p13_p10 = scmp.ge.s32.totalorder %s16_s19, 6   ;;  %s1415_s13 = smov %s1186_s14 }
 0x105   : > { %s1416_s14 = smov %s1298_s5  ;;  %s1417_s15 = smov %s1198_s17 }
 0x106   : > { %s1418_s16 = smov %s1202_s18  ;;  %s1419_s17 = smov %s1422_s21 }
 0x107   : > { %s1420_s18 = smov %s1426_s22  ;;  %15 = sbr.rel (!%p13_p10) target bundleno = 5 (0x5), region = 72 }
 0x10c   :  { %923 = vsyncpa [#allocation3], 1 }
 0x10d   :  { %925 = vsyncpa [#allocation3 + $0x1], 1 }

</bundles_post_ra>
